<compile_context>
chip_gen: v7x
topology: tpu7x:2x2x1
jax: 0.10.0
libtpu: 0.0.40
codegen_flags: <defaults>
</compile_context>

<pallas_src>
import functools

import jax
import jax.numpy as jnp
import numpy as np
from jax import lax
from jax.experimental import pallas as pl
from jax.experimental.pallas import tpu as pltpu

FEAT_DIM = 128     # feature dim consumed by contrast_layer / classifier (from the module)
_NEG_BIG = -1e30   # bias for padded logit columns (ignored by softmax / max / argmax)


def _cifar_kernel(
    x_ref,       # (TB, C*H*W)        flattened input tile (lane-dense)
    a_ref,       # (C*H*W, 128)       folded conv+pool matrix (1/HW already applied)
    bconv_ref,   # (1, 128)
    wcat_ref,    # (128, 128+NCP)     [contrast W1 | classifier W (zero-padded cols)]
    bcat_ref,    # (1, 128+NCP)       [b1 | bcls, padded with -1e30]
    w2_ref,      # (128, 128)         contrast_layer[2]
    b2_ref,      # (1, 128)
    out_ref,     # (TB, 384+NCP)      [feat | contrast | padded logits | misc]
):
    tb = x_ref.shape[0]
    ncp = wcat_ref.shape[1] - FEAT_DIM

    # ---- backbone Conv2d(C,128,3,pad=1) + AdaptiveAvgPool2d((1,1)) + Flatten + ReLU, one GEMM ----
    feat = jnp.dot(x_ref[...], a_ref[...],
                   preferred_element_type=jnp.float32) + bconv_ref[...]
    feat = jnp.maximum(feat, 0.0)                 # F.relu(pool_layer(backbone(x)))

    # ---- fused head GEMM: [contrast_layer[0] | classifier] in one MXU pass ----
    hcat = jnp.dot(feat, wcat_ref[...],
                   preferred_element_type=jnp.float32) + bcat_ref[...]
    h1 = jnp.maximum(hcat[:, :FEAT_DIM], 0.0)     # contrast ReLU
    logits = hcat[:, FEAT_DIM:]                   # (TB, NCP); padded columns carry -1e30

    # ---- contrast_layer[2] + F.normalize(p=2, dim=1) ----
    cfeat = jnp.dot(h1, w2_ref[...],
                    preferred_element_type=jnp.float32) + b2_ref[...]
    sumsq = jnp.sum(cfeat * cfeat, axis=1, keepdims=True)
    contrast = cfeat * lax.rsqrt(jnp.maximum(sumsq, 1e-24))   # == x / max(||x||_2, 1e-12)

    # ---- softmax max / argmax without materializing probs ----
    # max(softmax(l)) == 1 / sum(exp(l - max(l)));  argmax(softmax(l)) == argmax(l)
    m = jnp.max(logits, axis=1, keepdims=True)
    e = jnp.exp(logits - m)
    conf = pl.reciprocal(jnp.sum(e, axis=1, keepdims=True), approx=True)   # (TB, 1)
    ids = lax.broadcasted_iota(jnp.int32, logits.shape, 1).astype(jnp.float32)
    pred = jnp.min(jnp.where(logits >= m, ids, float(ncp)),
                   axis=1, keepdims=True)         # first max index (torch-like tie break)

    # prediction carried as f32 lane value (exact for class counts < 2^24), cast in the wrapper
    col = lax.broadcasted_iota(jnp.int32, (tb, FEAT_DIM), 1)
    misc = jnp.where(col == 0, conf, jnp.where(col == 1, pred, 0.0))

    # ---- single lane-dense output slab (all offsets are multiples of 128 -> unmasked stores) ----
    out_ref[:, 0:FEAT_DIM] = feat
    out_ref[:, FEAT_DIM:2 * FEAT_DIM] = contrast
    out_ref[:, 2 * FEAT_DIM:2 * FEAT_DIM + ncp] = logits
    out_ref[:, 2 * FEAT_DIM + ncp:] = misc


def _pick_batch_tile(B):
    """>=2 grid steps when B>16 (v7x two TensorCores); <=256-row tiles; multiples of 8."""
    if B <= 16:
        return B
    half = -(-B // 2)                     # cdiv(B, 2)
    return min(256, ((half + 7) // 8) * 8)


@functools.partial(jax.jit, static_argnames=("num_classes",))
def cifar_model_forward(x, params, num_classes):
    """Replicates CIFARmodel.forward; returns the end_points dict."""
    B, C, H, W = x.shape
    chw = C * H * W
    x2 = x.reshape(B, chw).astype(jnp.float32)        # lane-dense view of x, read once

    # Fold Conv2d(C,128,3,pad=1) + AdaptiveAvgPool2d((1,1)) into one (C*H*W, 128) matrix A.
    # tap mask M[kh,kw,r,s]: which input pixels contribute to the pooled sum for tap (kh,kw)
    # of the zero-padded conv (kh=0 drops the last row, kh=2 drops the first row; same for kw).
    r = jnp.arange(H)
    s = jnp.arange(W)
    rowmask = jnp.stack([(r < H - 1), jnp.ones((H,), bool), (r >= 1)]).astype(jnp.float32)
    colmask = jnp.stack([(s < W - 1), jnp.ones((W,), bool), (s >= 1)]).astype(jnp.float32)
    tap_mask = rowmask[:, None, :, None] * colmask[None, :, None, :]       # (3,3,H,W)
    A = jnp.einsum("ockl,klhw->chwo", params["conv_w"], tap_mask,
                   precision=lax.Precision.HIGHEST) * (1.0 / float(H * W))  # 1/HW folded in
    A = A.reshape(chw, FEAT_DIM)
    bconv = params["conv_b"].reshape(1, FEAT_DIM)

    ncp = max(128, ((num_classes + 127) // 128) * 128)            # lane-dense logits width
    wcls_pad = jnp.pad(params["wcls"], ((0, 0), (0, ncp - num_classes)))
    bcls_pad = jnp.concatenate(
        [params["bcls"], jnp.full((ncp - num_classes,), _NEG_BIG, jnp.float32)])
    wcat = jnp.concatenate([params["w1"], wcls_pad], axis=1)      # (128, 128+ncp)
    bcat = jnp.concatenate([params["b1"], bcls_pad]).reshape(1, FEAT_DIM + ncp)
    w2 = params["w2"]
    b2 = params["b2"].reshape(1, FEAT_DIM)

    tb = _pick_batch_tile(B)
    out_w = 3 * FEAT_DIM + ncp                                    # feat|contrast|logits|misc

    grid_spec = pltpu.PrefetchScalarGridSpec(
        num_scalar_prefetch=0,
        grid=(pl.cdiv(B, tb),),
        in_specs=[
            pl.BlockSpec((tb, chw), lambda i: (i, 0)),
            pl.BlockSpec((chw, FEAT_DIM), lambda i: (0, 0)),          # weights stay resident
            pl.BlockSpec((1, FEAT_DIM), lambda i: (0, 0)),
            pl.BlockSpec((FEAT_DIM, FEAT_DIM + ncp), lambda i: (0, 0)),
            pl.BlockSpec((1, FEAT_DIM + ncp), lambda i: (0, 0)),
            pl.BlockSpec((FEAT_DIM, FEAT_DIM), lambda i: (0, 0)),
            pl.BlockSpec((1, FEAT_DIM), lambda i: (0, 0)),
        ],
        out_specs=pl.BlockSpec((tb, out_w), lambda i: (i, 0)),
    )
    slab = pl.pallas_call(
        _cifar_kernel,
        out_shape=jax.ShapeDtypeStruct((B, out_w), jnp.float32),
        grid_spec=grid_spec,
        compiler_params=pltpu.CompilerParams(
            dimension_semantics=("parallel",),
        ),
    )(x2, A, bconv, wcat, bcat, w2, b2)

    base = 2 * FEAT_DIM + ncp
    return {
        "features": slab[:, :FEAT_DIM],
        "contrast_features": slab[:, FEAT_DIM:2 * FEAT_DIM],
        "logits": slab[:, 2 * FEAT_DIM:2 * FEAT_DIM + num_classes],
        "predictions": slab[:, base + 1].astype(jnp.int32),
        "confidences": slab[:, base],
    }


def init_params(key, in_channels, num_classes):
    ks = jax.random.split(key, 8)
    s = 0.1
    return {
        # backbone: Conv2d(in_channels, 128, 3, padding=1)
        "conv_w": s * jax.random.normal(ks[0], (FEAT_DIM, in_channels, 3, 3), jnp.float32),
        "conv_b": s * jax.random.normal(ks[1], (FEAT_DIM,), jnp.float32),
        # contrast_layer: Linear(128,128) -> ReLU -> Linear(128,128)   (stored as (in, out))
        "w1": s * jax.random.normal(ks[2], (FEAT_DIM, FEAT_DIM), jnp.float32),
        "b1": s * jax.random.normal(ks[3], (FEAT_DIM,), jnp.float32),
        "w2": s * jax.random.normal(ks[4], (FEAT_DIM, FEAT_DIM), jnp.float32),
        "b2": s * jax.random.normal(ks[5], (FEAT_DIM,), jnp.float32),
        # classifier: Linear(128, num_classes)
        "wcls": s * jax.random.normal(ks[6], (FEAT_DIM, num_classes), jnp.float32),
        "bcls": s * jax.random.normal(ks[7], (num_classes,), jnp.float32),
    }


def _reference_forward(x, params, num_classes):
    """Pure-JAX port of CIFARmodel.forward (torch math, no pool-first rewrite)."""
    hp = jax.lax.Precision.HIGHEST
    conv = lax.conv_general_dilated(
        x, params["conv_w"], window_strides=(1, 1), padding="SAME",
        dimension_numbers=("NCHW", "OIHW", "NCHW"), precision=hp)
    conv = conv + params["conv_b"][None, :, None, None]
    feat = jnp.maximum(jnp.mean(conv, axis=(2, 3)), 0.0)
    h1 = jnp.maximum(jnp.dot(feat, params["w1"], precision=hp) + params["b1"], 0.0)
    cf = jnp.dot(h1, params["w2"], precision=hp) + params["b2"]
    cf = cf / jnp.maximum(jnp.sqrt(jnp.sum(cf * cf, axis=1, keepdims=True)), 1e-12)
    logits = jnp.dot(feat, params["wcls"], precision=hp) + params["bcls"]
    probs = jax.nn.softmax(logits, axis=1)
    return {
        "features": feat,
        "contrast_features": cf,
        "logits": logits,
        "predictions": jnp.argmax(probs, axis=1),
        "confidences": jnp.max(probs, axis=1),
    }


if __name__ == "__main__":
    key = jax.random.PRNGKey(0)
    kx, kp = jax.random.split(key)

    B, C, H, W = 2, 4, 16, 16
    NUM_CLASSES = 10

    x = jax.random.normal(kx, (B, C, H, W), jnp.float32)   # NCHW input, like PyTorch
    params = init_params(kp, C, NUM_CLASSES)

    out = cifar_model_forward(x, params, NUM_CLASSES)
    jax.block_until_ready(out)

    assert out["features"].shape == (B, FEAT_DIM)
    assert out["contrast_features"].shape == (B, FEAT_DIM)
    assert out["logits"].shape == (B, NUM_CLASSES)
    assert out["predictions"].shape == (B,) and out["predictions"].dtype == jnp.int32
    assert out["confidences"].shape == (B,)

    ref = _reference_forward(x, params, NUM_CLASSES)
    np.testing.assert_allclose(out["features"], ref["features"], rtol=5e-3, atol=5e-3)
    np.testing.assert_allclose(out["contrast_features"], ref["contrast_features"],
                               rtol=5e-3, atol=5e-3)
    np.testing.assert_allclose(out["logits"], ref["logits"], rtol=5e-3, atol=5e-3)
    np.testing.assert_allclose(out["confidences"], ref["confidences"], rtol=5e-3, atol=5e-3)
    assert (np.asarray(out["predictions"]) == np.asarray(ref["predictions"])).all()

    print("KERNEL_OK")
</pallas_src>

<mosaic_0001>
module attributes {stable_mosaic.version = 11 : i64} {
  func.func @_cifar_kernel(%arg0: i32, %arg1: memref<2x1024xf32, #tpu.memory_space<vmem>>, %arg2: memref<1024x128xf32, #tpu.memory_space<vmem>>, %arg3: memref<1x128xf32, #tpu.memory_space<vmem>>, %arg4: memref<128x256xf32, #tpu.memory_space<vmem>>, %arg5: memref<1x256xf32, #tpu.memory_space<vmem>>, %arg6: memref<128x128xf32, #tpu.memory_space<vmem>>, %arg7: memref<1x128xf32, #tpu.memory_space<vmem>>, %arg8: memref<2x512xf32, #tpu.memory_space<vmem>>) attributes {dimension_semantics = [#tpu.dimension_semantics<parallel>], iteration_bounds = array<i64: 1>, scalar_prefetch = 0 : i64, scratch_operands = 0 : i64, tpu.core_type = #tpu.core_type<tc>, window_params = [{transform_indices = @transform_0, window_bounds = array<i64: 2, 1024>}, {pipeline_mode = #tpu.pipeline_mode<synchronous>, transform_indices = @transform_1, window_bounds = array<i64: 1024, 128>}, {pipeline_mode = #tpu.pipeline_mode<synchronous>, transform_indices = @transform_2, window_bounds = array<i64: 1, 128>}, {pipeline_mode = #tpu.pipeline_mode<synchronous>, transform_indices = @transform_3, window_bounds = array<i64: 128, 256>}, {pipeline_mode = #tpu.pipeline_mode<synchronous>, transform_indices = @transform_4, window_bounds = array<i64: 1, 256>}, {pipeline_mode = #tpu.pipeline_mode<synchronous>, transform_indices = @transform_5, window_bounds = array<i64: 128, 128>}, {pipeline_mode = #tpu.pipeline_mode<synchronous>, transform_indices = @transform_6, window_bounds = array<i64: 1, 128>}, {transform_indices = @transform_7, window_bounds = array<i64: 2, 512>}]} {
    %c0 = arith.constant 0 : index
    %c0_0 = arith.constant 0 : index
    %0 = vector.load %arg1[%c0, %c0_0] : memref<2x1024xf32, #tpu.memory_space<vmem>>, vector<2x1024xf32>
    %c0_1 = arith.constant 0 : index
    %c0_2 = arith.constant 0 : index
    %1 = vector.load %arg2[%c0_1, %c0_2] : memref<1024x128xf32, #tpu.memory_space<vmem>>, vector<1024x128xf32>
    %cst = arith.constant dense<0.000000e+00> : vector<2x128xf32>
    %2 = tpu.matmul %0, %1, %cst {dimension_numbers = #tpu.dot_dimension_numbers<[1], [0], [0], [1], [0, 0, 1, 1], [], []>} : vector<2x1024xf32>, vector<1024x128xf32>, vector<2x128xf32> -> vector<2x128xf32>
    %c0_3 = arith.constant 0 : index
    %c0_4 = arith.constant 0 : index
    %3 = vector.load %arg3[%c0_3, %c0_4] : memref<1x128xf32, #tpu.memory_space<vmem>>, vector<1x128xf32>
    %4 = vector.broadcast %3 : vector<1x128xf32> to vector<2x128xf32>
    %5 = arith.addf %2, %4 : vector<2x128xf32>
    %cst_5 = arith.constant 0.000000e+00 : f32
    %6 = vector.broadcast %cst_5 : f32 to vector<2x128xf32>
    %7 = arith.maximumf %5, %6 : vector<2x128xf32>
    %c0_6 = arith.constant 0 : index
    %c0_7 = arith.constant 0 : index
    %8 = vector.load %arg4[%c0_6, %c0_7] : memref<128x256xf32, #tpu.memory_space<vmem>>, vector<128x256xf32>
    %cst_8 = arith.constant dense<0.000000e+00> : vector<2x256xf32>
    %9 = tpu.matmul %7, %8, %cst_8 {dimension_numbers = #tpu.dot_dimension_numbers<[1], [0], [0], [1], [0, 0, 1, 1], [], []>} : vector<2x128xf32>, vector<128x256xf32>, vector<2x256xf32> -> vector<2x256xf32>
    %c0_9 = arith.constant 0 : index
    %c0_10 = arith.constant 0 : index
    %10 = vector.load %arg5[%c0_9, %c0_10] : memref<1x256xf32, #tpu.memory_space<vmem>>, vector<1x256xf32>
    %11 = vector.broadcast %10 : vector<1x256xf32> to vector<2x256xf32>
    %12 = arith.addf %9, %11 : vector<2x256xf32>
    %13 = vector.extract_strided_slice %12 {offsets = [0, 0], sizes = [2, 128], strides = [1, 1]} : vector<2x256xf32> to vector<2x128xf32>
    %cst_11 = arith.constant 0.000000e+00 : f32
    %14 = vector.broadcast %cst_11 : f32 to vector<2x128xf32>
    %15 = arith.maximumf %13, %14 : vector<2x128xf32>
    %16 = vector.extract_strided_slice %12 {offsets = [0, 128], sizes = [2, 128], strides = [1, 1]} : vector<2x256xf32> to vector<2x128xf32>
    %c0_12 = arith.constant 0 : index
    %c0_13 = arith.constant 0 : index
    %17 = vector.load %arg6[%c0_12, %c0_13] : memref<128x128xf32, #tpu.memory_space<vmem>>, vector<128x128xf32>
    %cst_14 = arith.constant dense<0.000000e+00> : vector<2x128xf32>
    %18 = tpu.matmul %15, %17, %cst_14 {dimension_numbers = #tpu.dot_dimension_numbers<[1], [0], [0], [1], [0, 0, 1, 1], [], []>} : vector<2x128xf32>, vector<128x128xf32>, vector<2x128xf32> -> vector<2x128xf32>
    %c0_15 = arith.constant 0 : index
    %c0_16 = arith.constant 0 : index
    %19 = vector.load %arg7[%c0_15, %c0_16] : memref<1x128xf32, #tpu.memory_space<vmem>>, vector<1x128xf32>
    %20 = vector.broadcast %19 : vector<1x128xf32> to vector<2x128xf32>
    %21 = arith.addf %18, %20 : vector<2x128xf32>
    %22 = arith.mulf %21, %21 : vector<2x128xf32>
    %cst_17 = arith.constant dense<0.000000e+00> : vector<2xf32>
    %23 = vector.multi_reduction <add>, %22, %cst_17 [1] : vector<2x128xf32> to vector<2xf32>
    %24 = vector.shape_cast %23 : vector<2xf32> to vector<2x1xf32>
    %cst_18 = arith.constant 1.000000e-24 : f32
    %25 = vector.broadcast %cst_18 : f32 to vector<2x1xf32>
    %26 = arith.maximumf %24, %25 : vector<2x1xf32>
    %27 = math.rsqrt %26 : vector<2x1xf32>
    %28 = vector.broadcast %27 : vector<2x1xf32> to vector<2x128xf32>
    %29 = arith.mulf %21, %28 : vector<2x128xf32>
    %cst_19 = arith.constant dense<0xFF800000> : vector<2xf32>
    %30 = vector.multi_reduction <maximumf>, %16, %cst_19 [1] : vector<2x128xf32> to vector<2xf32>
    %31 = vector.shape_cast %30 : vector<2xf32> to vector<2x1xf32>
    %32 = vector.broadcast %31 : vector<2x1xf32> to vector<2x128xf32>
    %33 = arith.subf %16, %32 : vector<2x128xf32>
    %34 = math.exp %33 : vector<2x128xf32>
    %cst_20 = arith.constant dense<0.000000e+00> : vector<2xf32>
    %35 = vector.multi_reduction <add>, %34, %cst_20 [1] : vector<2x128xf32> to vector<2xf32>
    %36 = vector.shape_cast %35 : vector<2xf32> to vector<2x1xf32>
    %37 = tpu.reciprocal %36 {approx = true} : vector<2x1xf32> -> vector<2x1xf32>
    %38 = tpu.iota {dimensions = array<i32: 1>} : vector<2x128xi32>
    %39 = arith.sitofp %38 : vector<2x128xi32> to vector<2x128xf32>
    %40 = vector.broadcast %31 : vector<2x1xf32> to vector<2x128xf32>
    %41 = arith.cmpf oge, %16, %40 : vector<2x128xf32>
    %cst_21 = arith.constant 1.280000e+02 : f32
    %42 = vector.broadcast %cst_21 : f32 to vector<2x128xf32>
    %43 = arith.select %41, %39, %42 : vector<2x128xi1>, vector<2x128xf32>
    %cst_22 = arith.constant dense<0x7F800000> : vector<2xf32>
    %44 = vector.multi_reduction <minimumf>, %43, %cst_22 [1] : vector<2x128xf32> to vector<2xf32>
    %45 = vector.shape_cast %44 : vector<2xf32> to vector<2x1xf32>
    %46 = tpu.iota {dimensions = array<i32: 1>} : vector<2x128xi32>
    %c0_i32 = arith.constant 0 : i32
    %47 = vector.broadcast %c0_i32 : i32 to vector<2x128xi32>
    %48 = arith.cmpi eq, %46, %47 : vector<2x128xi32>
    %c1_i32 = arith.constant 1 : i32
    %49 = vector.broadcast %c1_i32 : i32 to vector<2x128xi32>
    %50 = arith.cmpi eq, %46, %49 : vector<2x128xi32>
    %cst_23 = arith.constant 0.000000e+00 : f32
    %51 = vector.shape_cast %45 : vector<2x1xf32> to vector<2x1xf32>
    %52 = vector.broadcast %51 : vector<2x1xf32> to vector<2x128xf32>
    %53 = vector.broadcast %cst_23 : f32 to vector<2x128xf32>
    %54 = arith.select %50, %52, %53 : vector<2x128xi1>, vector<2x128xf32>
    %55 = vector.shape_cast %37 : vector<2x1xf32> to vector<2x1xf32>
    %56 = vector.broadcast %55 : vector<2x1xf32> to vector<2x128xf32>
    %57 = arith.select %48, %56, %54 : vector<2x128xi1>, vector<2x128xf32>
    %c0_24 = arith.constant 0 : index
    %c0_25 = arith.constant 0 : index
    %58 = vector.load %arg8[%c0_24, %c0_25] : memref<2x512xf32, #tpu.memory_space<vmem>>, vector<2x128xf32>
    tpu.vector_store %arg8[%c0_24, %c0_25], %7 {strides = array<i32>} : memref<2x512xf32, #tpu.memory_space<vmem>>, vector<2x128xf32>,
    %c0_26 = arith.constant 0 : index
    %c128 = arith.constant 128 : index
    %59 = vector.load %arg8[%c0_26, %c128] : memref<2x512xf32, #tpu.memory_space<vmem>>, vector<2x128xf32>
    tpu.vector_store %arg8[%c0_26, %c128], %29 {strides = array<i32>} : memref<2x512xf32, #tpu.memory_space<vmem>>, vector<2x128xf32>,
    %c0_27 = arith.constant 0 : index
    %c256 = arith.constant 256 : index
    %60 = vector.load %arg8[%c0_27, %c256] : memref<2x512xf32, #tpu.memory_space<vmem>>, vector<2x128xf32>
    tpu.vector_store %arg8[%c0_27, %c256], %16 {strides = array<i32>} : memref<2x512xf32, #tpu.memory_space<vmem>>, vector<2x128xf32>,
    %c0_28 = arith.constant 0 : index
    %c384 = arith.constant 384 : index
    %61 = vector.load %arg8[%c0_28, %c384] : memref<2x512xf32, #tpu.memory_space<vmem>>, vector<2x128xf32>
    tpu.vector_store %arg8[%c0_28, %c384], %57 {strides = array<i32>} : memref<2x512xf32, #tpu.memory_space<vmem>>, vector<2x128xf32>,
    return
  }
  func.func @transform_0(%arg0: i32) -> (i32, i32) {
    %c0_i32 = arith.constant 0 : i32
    %c0_i32_0 = arith.constant 0 : i32
    return %arg0, %c0_i32 : i32, i32
  }
  func.func @transform_1(%arg0: i32) -> (i32, i32) {
    %c0_i32 = arith.constant 0 : i32
    %c0_i32_0 = arith.constant 0 : i32
    %c0_i32_1 = arith.constant 0 : i32
    return %c0_i32, %c0_i32_0 : i32, i32
  }
  func.func @transform_2(%arg0: i32) -> (i32, i32) {
    %c0_i32 = arith.constant 0 : i32
    %c0_i32_0 = arith.constant 0 : i32
    %c0_i32_1 = arith.constant 0 : i32
    return %c0_i32, %c0_i32_0 : i32, i32
  }
  func.func @transform_3(%arg0: i32) -> (i32, i32) {
    %c0_i32 = arith.constant 0 : i32
    %c0_i32_0 = arith.constant 0 : i32
    %c0_i32_1 = arith.constant 0 : i32
    return %c0_i32, %c0_i32_0 : i32, i32
  }
  func.func @transform_4(%arg0: i32) -> (i32, i32) {
    %c0_i32 = arith.constant 0 : i32
    %c0_i32_0 = arith.constant 0 : i32
    %c0_i32_1 = arith.constant 0 : i32
    return %c0_i32, %c0_i32_0 : i32, i32
  }
  func.func @transform_5(%arg0: i32) -> (i32, i32) {
    %c0_i32 = arith.constant 0 : i32
    %c0_i32_0 = arith.constant 0 : i32
    %c0_i32_1 = arith.constant 0 : i32
    return %c0_i32, %c0_i32_0 : i32, i32
  }
  func.func @transform_6(%arg0: i32) -> (i32, i32) {
    %c0_i32 = arith.constant 0 : i32
    %c0_i32_0 = arith.constant 0 : i32
    %c0_i32_1 = arith.constant 0 : i32
    return %c0_i32, %c0_i32_0 : i32, i32
  }
  func.func @transform_7(%arg0: i32) -> (i32, i32) {
    %c0_i32 = arith.constant 0 : i32
    %c0_i32_0 = arith.constant 0 : i32
    return %arg0, %c0_i32 : i32, i32
  }
}

</mosaic_0001>

<bundles_post_ra>
// kernel: cifar_model_forward.1
= control target key start
LH: loop header
LB: loop body
LE: loop exit
PB: predicated region body
PF: predicated region fallthrough
CT: control target
= control target key end

     0   :  { %v1125_v47 = vmov 1983009808   ;;  %v169_v49 = vlaneseq  ;;  %vm1128_vm0 = vmmov 0   ;;  %vm698_vm1 = vcmask 1041408   ;;  %s1747_s1 = inlined_call_operand.vmem [shape: f32[1024,128], index: 1, kind: input, shape index: {}]   ;;  %s1748_s0 = inlined_call_operand.vmem [shape: f32[2,1024], index: 0, kind: input, shape index: {}]   ;;  %s1749_s3 = inlined_call_operand.vmem [shape: f32[128,256], index: 3, kind: input, shape index: {}]   ;;  %s1750_s5 = inlined_call_operand.vmem [shape: f32[128,128], index: 5, kind: input, shape index: {}]   ;;  %s1751_s2 = inlined_call_operand.vmem [shape: f32[1,128], index: 2, kind: input, shape index: {}]   ;;  %s1752_s7 = inlined_call_operand.vmem [shape: f32[2,512], index: 7, kind: output, shape index: {}]   ;;  %s1753_s4 = inlined_call_operand.vmem [shape: f32[1,256], index: 4, kind: input, shape index: {}]   ;;  %s1754_s6 = inlined_call_operand.vmem [shape: f32[1,128], index: 6, kind: input, shape index: {}]  }
   0x1   :  { %v44_v0 = vld [vmem:[%s1747_s1 + $0x80] sm:$0xff]  ;;  %v45_v1 = vld [vmem:[%s1747_s1 + $0x88] sm:$0xff]  ;;  %v46_v11 = vld [vmem:[%s1747_s1 + $0x90] sm:$0xff]  ;;  %v167_v48 = vunpack.c.l.s4 %v1125_v47 }
   0x2   :  { %v28_v2 = vld [vmem:[%s1747_s1] sm:$0xff]  ;;  %v929_v3 = vpack.c.bf16 %v45_v1, %v44_v0  ;;  %v29_v4 = vld [vmem:[%s1747_s1 + $0x8] sm:$0xff]  ;;  %v47_v13 = vld [vmem:[%s1747_s1 + $0x98] sm:$0xff]  ;;  %v1296_v0 = vshrl.u32 %v169_v49, 7 }
   0x3   :  { %v76_v5 = vld [vmem:[%s1747_s1 + $0x180] sm:$0xff]  ;;  %v77_v6 = vld [vmem:[%s1747_s1 + $0x188] sm:$0xff]  ;;  %v931_v7 = vpack.c.bf16 %v29_v4, %v28_v2  ;;  %v30_v14 = vld [vmem:[%s1747_s1 + $0x10] sm:$0xff]  ;;  %v933_v16 = vpack.c.bf16 %v47_v13, %v46_v11  ;;  %v168_v63 = vunpack.c.0.s8 %v167_v48 }
   0x4   :  { %v961_v8 = vpack.c.bf16 %v77_v6, %v76_v5  ;;  %v60_v9 = vld [vmem:[%s1747_s1 + $0x100] sm:$0xff]  ;;  %v61_v10 = vld [vmem:[%s1747_s1 + $0x108] sm:$0xff]  ;;  %930 = vmatprep.subr.bf16.mxu0 %v929_v3  ;;  %v31_v15 = vld [vmem:[%s1747_s1 + $0x18] sm:$0xff] }
   0x5   :  { %v963_v12 = vpack.c.bf16 %v61_v10, %v60_v9  ;;  %932 = vmatpush3.bf16.msra.mxu0 %v931_v7  ;;  %v935_v17 = vpack.c.bf16 %v31_v15, %v30_v14  ;;  %v78_v18 = vld [vmem:[%s1747_s1 + $0x190] sm:$0xff]  ;;  %v79_v19 = vld [vmem:[%s1747_s1 + $0x198] sm:$0xff]  ;;  %v48_v23 = vld [vmem:[%s1747_s1 + $0xa0] sm:$0xff]  ;;  %v171_v13 = vsub.s32 %v168_v63, %v1296_v0 }
   0x6   :  { %962 = vmatprep.subr.bf16.mxu1 %v961_v8  ;;  %v62_v20 = vld [vmem:[%s1747_s1 + $0x110] sm:$0xff]  ;;  %v965_v21 = vpack.c.bf16 %v79_v19, %v78_v18  ;;  %v63_v22 = vld [vmem:[%s1747_s1 + $0x118] sm:$0xff]  ;;  %v49_v24 = vld [vmem:[%s1747_s1 + $0xa8] sm:$0xff]  ;;  %934 = vmatprep.subr.bf16.mxu0 %v933_v16 }
   0x7   :  { %964 = vmatpush3.bf16.msra.mxu1 %v963_v12  ;;  %v967_v25 = vpack.c.bf16 %v63_v22, %v62_v20  ;;  %v937_v26 = vpack.c.bf16 %v49_v24, %v48_v23  ;;  %v32_v27 = vld [vmem:[%s1747_s1 + $0x20] sm:$0xff]  ;;  %v33_v28 = vld [vmem:[%s1747_s1 + $0x28] sm:$0xff]  ;;  %v50_v35 = vld [vmem:[%s1747_s1 + $0xb0] sm:$0xff] }
   0x8   :  { %v80_v29 = vld [vmem:[%s1747_s1 + $0x1a0] sm:$0xff]  ;;  %966 = vmatprep.subr.bf16.mxu1 %v965_v21  ;;  %v81_v30 = vld [vmem:[%s1747_s1 + $0x1a8] sm:$0xff]  ;;  %v939_v33 = vpack.c.bf16 %v33_v28, %v32_v27  ;;  %v51_v36 = vld [vmem:[%s1747_s1 + $0xb8] sm:$0xff] }
   0x9   :  { %v64_v31 = vld [vmem:[%s1747_s1 + $0x120] sm:$0xff]  ;;  %v65_v32 = vld [vmem:[%s1747_s1 + $0x128] sm:$0xff]  ;;  %936 = vmatpush3.bf16.msra.mxu0 %v935_v17  ;;  %v969_v34 = vpack.c.bf16 %v81_v30, %v80_v29  ;;  %v34_v37 = vld [vmem:[%s1747_s1 + $0x30] sm:$0xff]  ;;  %v941_v39 = vpack.c.bf16 %v51_v36, %v50_v35 }
   0xa   :  { %938 = vmatprep.subr.bf16.mxu0 %v937_v26  ;;  %v971_v38 = vpack.c.bf16 %v65_v32, %v64_v31  ;;  %v35_v40 = vld [vmem:[%s1747_s1 + $0x38] sm:$0xff]  ;;  %v82_v41 = vld [vmem:[%s1747_s1 + $0x1b0] sm:$0xff]  ;;  %v52_v46 = vld [vmem:[%s1747_s1 + $0xc0] sm:$0xff] }
   0xb   :  { %968 = vmatpush3.bf16.msra.mxu1 %v967_v25  ;;  %v83_v42 = vld [vmem:[%s1747_s1 + $0x1b8] sm:$0xff]  ;;  %v66_v44 = vld [vmem:[%s1747_s1 + $0x130] sm:$0xff]  ;;  %v53_v50 = vld [vmem:[%s1747_s1 + $0xc8] sm:$0xff]  ;;  %v943_v51 = vpack.c.bf16 %v35_v40, %v34_v37 }
   0xc   :  { %970 = vmatprep.subr.bf16.mxu1 %v969_v34  ;;  %v973_v43 = vpack.c.bf16 %v83_v42, %v82_v41  ;;  %v67_v45 = vld [vmem:[%s1747_s1 + $0x138] sm:$0xff]  ;;  %v84_v52 = vld [vmem:[%s1747_s1 + $0x1c0] sm:$0xff]  ;;  %v85_v53 = vld [vmem:[%s1747_s1 + $0x1c8] sm:$0xff]  ;;  %v945_v55 = vpack.c.bf16 %v53_v50, %v52_v46 }
   0xd   :  { %940 = vmatpush3.bf16.msra.mxu0 %v939_v33  ;;  %v975_v54 = vpack.c.bf16 %v67_v45, %v66_v44  ;;  %v36_v56 = vld [vmem:[%s1747_s1 + $0x40] sm:$0xff]  ;;  %v37_v57 = vld [vmem:[%s1747_s1 + $0x48] sm:$0xff]  ;;  %v977_v59 = vpack.c.bf16 %v85_v53, %v84_v52  ;;  %v54_v61 = vld [vmem:[%s1747_s1 + $0xd0] sm:$0xff] }
   0xe   :  { %942 = vmatprep.subr.bf16.mxu0 %v941_v39  ;;  %v68_v58 = vld [vmem:[%s1747_s1 + $0x140] sm:$0xff]  ;;  %v69_v60 = vld [vmem:[%s1747_s1 + $0x148] sm:$0xff]  ;;  %v55_v62 = vld [vmem:[%s1747_s1 + $0xd8] sm:$0xff]  ;;  %v947_v3 = vpack.c.bf16 %v37_v57, %v36_v56 }
   0xf   :  { %972 = vmatpush3.bf16.msra.mxu1 %v971_v38  ;;  %v86_v1 = vld [vmem:[%s1747_s1 + $0x1d0] sm:$0xff]  ;;  %v87_v2 = vld [vmem:[%s1747_s1 + $0x1d8] sm:$0xff]  ;;  %v979_v4 = vpack.c.bf16 %v69_v60, %v68_v58  ;;  %v949_v5 = vpack.c.bf16 %v55_v62, %v54_v61  ;;  %v56_v11 = vld [vmem:[%s1747_s1 + $0xe0] sm:$0xff] }
  0x10   :  { %974 = vmatprep.subr.bf16.mxu1 %v973_v43  ;;  %v38_v6 = vld [vmem:[%s1747_s1 + $0x50] sm:$0xff]  ;;  %v39_v7 = vld [vmem:[%s1747_s1 + $0x58] sm:$0xff]  ;;  %v981_v9 = vpack.c.bf16 %v87_v2, %v86_v1  ;;  %v57_v12 = vld [vmem:[%s1747_s1 + $0xe8] sm:$0xff] }
  0x11   :  { %944 = vmatpush3.bf16.msra.mxu0 %v943_v51  ;;  %v70_v8 = vld [vmem:[%s1747_s1 + $0x150] sm:$0xff]  ;;  %v71_v10 = vld [vmem:[%s1747_s1 + $0x158] sm:$0xff]  ;;  %v88_v14 = vld [vmem:[%s1747_s1 + $0x1e0] sm:$0xff]  ;;  %v951_v16 = vpack.c.bf16 %v39_v7, %v38_v6  ;;  %v953_v19 = vpack.c.bf16 %v57_v12, %v56_v11 }
  0x12   :  { %946 = vmatprep.subr.bf16.mxu0 %v945_v55  ;;  %v89_v15 = vld [vmem:[%s1747_s1 + $0x1e8] sm:$0xff]  ;;  %v40_v17 = vld [vmem:[%s1747_s1 + $0x60] sm:$0xff]  ;;  %v983_v18 = vpack.c.bf16 %v71_v10, %v70_v8  ;;  %v58_v25 = vld [vmem:[%s1747_s1 + $0xf0] sm:$0xff] }
  0x13   :  { %976 = vmatpush3.bf16.msra.mxu1 %v975_v54  ;;  %v41_v20 = vld [vmem:[%s1747_s1 + $0x68] sm:$0xff]  ;;  %v72_v21 = vld [vmem:[%s1747_s1 + $0x160] sm:$0xff]  ;;  %v985_v23 = vpack.c.bf16 %v89_v15, %v88_v14  ;;  %v59_v26 = vld [vmem:[%s1747_s1 + $0xf8] sm:$0xff] }
  0x14   :  { %978 = vmatprep.subr.bf16.mxu1 %v977_v59  ;;  %v26_v22 = vld [vmem:[%s1748_s0] sm:$0xff]  ;;  %v73_v24 = vld [vmem:[%s1747_s1 + $0x168] sm:$0xff]  ;;  %v90_v29 = vld [vmem:[%s1747_s1 + $0x1f0] sm:$0xff]  ;;  %v955_v31 = vpack.c.bf16 %v41_v20, %v40_v17  ;;  %v957_v36 = vpack.c.bf16 %v59_v26, %v58_v25 }
  0x15   :  { %948 = vmatpush3.bf16.msra.mxu0 %v947_v3  ;;  %v172_v27 = vrot.slane %v26_v22, %v171_v13  ;;  %v165_v28 = vcombine.high %v26_v22, %v26_v22  ;;  %v91_v30 = vld [vmem:[%s1747_s1 + $0x1f8] sm:$0xff]  ;;  %v27_v32 = vld [vmem:[%s1748_s0 + $0x8] sm:$0xff]  ;;  %v987_v35 = vpack.c.bf16 %v73_v24, %v72_v21  ;;  %v42_v37 = vld [vmem:[%s1747_s1 + $0x70] sm:$0xff] }
  0x16   :  { %950 = vmatprep.subr.bf16.mxu0 %v949_v5  ;;  %v43_v38 = vld [vmem:[%s1747_s1 + $0x78] sm:$0xff]  ;;  %v74_v39 = vld [vmem:[%s1747_s1 + $0x170] sm:$0xff]  ;;  %v989_v40 = vpack.c.bf16 %v91_v30, %v90_v29  ;;  %v108_v42 = vld [vmem:[%s1747_s1 + $0x280] sm:$0xff]  ;;  %v182_v45 = vcombine.high %v27_v32, %v27_v32  ;;  %v1401_v59 = vrot.slane %v27_v32, %v171_v13 }
  0x17   :  { %980 = vmatpush3.bf16.msra.mxu1 %v979_v4  ;;  %v180_v33 = vcombine.high %v172_v27, %v172_v27  ;;  %v179_v34 = vrot.slane %v165_v28, %v171_v13  ;;  %v75_v41 = vld [vmem:[%s1747_s1 + $0x178] sm:$0xff]  ;;  %v109_v43 = vld [vmem:[%s1747_s1 + $0x288] sm:$0xff]  ;;  %v140_v46 = vld [vmem:[%s1747_s1 + $0x380] sm:$0xff]  ;;  %v959_v48 = vpack.c.bf16 %v43_v38, %v42_v37 }
  0x18   :  { %982 = vmatprep.subr.bf16.mxu1 %v981_v9  ;;  %v141_v47 = vld [vmem:[%s1747_s1 + $0x388] sm:$0xff]  ;;  %v991_v50 = vpack.c.bf16 %v75_v41, %v74_v39  ;;  %v993_v51 = vpack.c.bf16 %v109_v43, %v108_v42  ;;  %v92_v52 = vld [vmem:[%s1747_s1 + $0x200] sm:$0xff]  ;;  %v110_v57 = vld [vmem:[%s1747_s1 + $0x290] sm:$0xff]  ;;  %v1409_v62 = vrot.slane %v182_v45, %v171_v13  ;;  %v197_v10 = vcombine.high %v1401_v59, %v1401_v59 }
  0x19   :  { %952 = vmatpush3.bf16.msra.mxu0 %v951_v16  ;;  %271 = vmatprep.mubr.f32.mxu0 %v180_v33  ;;  %v181_v44 = vcombine.high %v179_v34, %v179_v34  ;;  %v93_v53 = vld [vmem:[%s1747_s1 + $0x208] sm:$0xff]  ;;  %v124_v54 = vld [vmem:[%s1747_s1 + $0x300] sm:$0xff]  ;;  %v1025_v55 = vpack.c.bf16 %v141_v47, %v140_v46  ;;  %v111_v58 = vld [vmem:[%s1747_s1 + $0x298] sm:$0xff] }
  0x1a   :  { %954 = vmatprep.subr.bf16.mxu0 %v953_v19  ;;  %v125_v56 = vld [vmem:[%s1747_s1 + $0x308] sm:$0xff]  ;;  %v142_v60 = vld [vmem:[%s1747_s1 + $0x390] sm:$0xff]  ;;  %v143_v61 = vld [vmem:[%s1747_s1 + $0x398] sm:$0xff]  ;;  %v995_v63 = vpack.c.bf16 %v93_v53, %v92_v52  ;;  %v997_v2 = vpack.c.bf16 %v111_v58, %v110_v57  ;;  %v198_v13 = vcombine.high %v1409_v62, %v1409_v62 }
  0x1b   :  { %984 = vmatpush3.bf16.msra.mxu1 %v983_v18  ;;  %341 = vmatprep.mubr.f32.mxu1 %v181_v44  ;;  %v1027_v1 = vpack.c.bf16 %v125_v56, %v124_v54  ;;  %v94_v3 = vld [vmem:[%s1747_s1 + $0x210] sm:$0xff]  ;;  %v95_v4 = vld [vmem:[%s1747_s1 + $0x218] sm:$0xff]  ;;  %v1029_v6 = vpack.c.bf16 %v143_v61, %v142_v60  ;;  %v112_v8 = vld [vmem:[%s1747_s1 + $0x2a0] sm:$0xff] }
  0x1c   :  { %986 = vmatprep.subr.bf16.mxu1 %v985_v23  ;;  %v126_v5 = vld [vmem:[%s1747_s1 + $0x310] sm:$0xff]  ;;  %v127_v7 = vld [vmem:[%s1747_s1 + $0x318] sm:$0xff]  ;;  %v113_v9 = vld [vmem:[%s1747_s1 + $0x2a8] sm:$0xff]  ;;  %v999_v14 = vpack.c.bf16 %v95_v4, %v94_v3 }
  0x1d   :  { %956 = vmatpush3.bf16.msra.mxu0 %v955_v31  ;;  %v144_v11 = vld [vmem:[%s1747_s1 + $0x3a0] sm:$0xff]  ;;  %v145_v12 = vld [vmem:[%s1747_s1 + $0x3a8] sm:$0xff]  ;;  %v1031_v15 = vpack.c.bf16 %v127_v7, %v126_v5  ;;  %v1001_v16 = vpack.c.bf16 %v113_v9, %v112_v8  ;;  %v114_v22 = vld [vmem:[%s1747_s1 + $0x2b0] sm:$0xff] }
  0x1e   :  { %958 = vmatprep.subr.bf16.mxu0 %v957_v36  ;;  %v96_v17 = vld [vmem:[%s1747_s1 + $0x220] sm:$0xff]  ;;  %v97_v18 = vld [vmem:[%s1747_s1 + $0x228] sm:$0xff]  ;;  %v1033_v20 = vpack.c.bf16 %v145_v12, %v144_v11  ;;  %v115_v23 = vld [vmem:[%s1747_s1 + $0x2b8] sm:$0xff] }
  0x1f   :  { %988 = vmatpush3.bf16.msra.mxu1 %v987_v35  ;;  %v128_v19 = vld [vmem:[%s1747_s1 + $0x320] sm:$0xff]  ;;  %v129_v21 = vld [vmem:[%s1747_s1 + $0x328] sm:$0xff]  ;;  %v146_v24 = vld [vmem:[%s1747_s1 + $0x3b0] sm:$0xff]  ;;  %v1003_v26 = vpack.c.bf16 %v97_v18, %v96_v17  ;;  %v1005_v28 = vpack.c.bf16 %v115_v23, %v114_v22 }
  0x20   :  { %990 = vmatprep.subr.bf16.mxu1 %v989_v40  ;;  %v147_v25 = vld [vmem:[%s1747_s1 + $0x3b8] sm:$0xff]  ;;  %v98_v29 = vld [vmem:[%s1747_s1 + $0x230] sm:$0xff]  ;;  %v117_v35 = vld [vmem:[%s1747_s1 + $0x2c8] sm:$0xff] }
  0x21   :  { %960 = vmatpush3.bf16.msra.mxu0 %v959_v48  ;;  %v99_v30 = vld [vmem:[%s1747_s1 + $0x238] sm:$0xff]  ;;  %v130_v31 = vld [vmem:[%s1747_s1 + $0x330] sm:$0xff]  ;;  %v1037_v32 = vpack.c.bf16 %v147_v25, %v146_v24  ;;  %v148_v36 = vld [vmem:[%s1747_s1 + $0x3c0] sm:$0xff] }
  0x22   :  { %994 = vmatprep.subr.bf16.mxu0 %v993_v51  ;;  %v131_v33 = vld [vmem:[%s1747_s1 + $0x338] sm:$0xff]  ;;  %v149_v37 = vld [vmem:[%s1747_s1 + $0x3c8] sm:$0xff]  ;;  %v1007_v38 = vpack.c.bf16 %v99_v30, %v98_v29  ;;  %v100_v41 = vld [vmem:[%s1747_s1 + $0x240] sm:$0xff] }
  0x23   :  { %992 = vmatpush3.bf16.msra.mxu1 %v991_v50  ;;  %v1039_v39 = vpack.c.bf16 %v131_v33, %v130_v31  ;;  %v101_v42 = vld [vmem:[%s1747_s1 + $0x248] sm:$0xff]  ;;  %v132_v43 = vld [vmem:[%s1747_s1 + $0x340] sm:$0xff]  ;;  %v1041_v44 = vpack.c.bf16 %v149_v37, %v148_v36  ;;  %v118_v46 = vld [vmem:[%s1747_s1 + $0x2d0] sm:$0xff] }
  0x24   :  { %1026 = vmatprep.subr.bf16.mxu1 %v1025_v55  ;;  %272 = vmatmul.mubr.f32.vlgmr.msra.gmra.mrb[0].mxu0 %v172_v27  ;;  %v1035_v27 = vpack.c.bf16 %v129_v21, %v128_v19  ;;  %v133_v45 = vld [vmem:[%s1747_s1 + $0x348] sm:$0xff]  ;;  %v119_v47 = vld [vmem:[%s1747_s1 + $0x2d8] sm:$0xff]  ;;  %v150_v48 = vld [vmem:[%s1747_s1 + $0x3d0] sm:$0xff]  ;;  %v1011_v51 = vpack.c.bf16 %v101_v42, %v100_v41 }
  0x25   :  { %996 = vmatpush3.bf16.msra.mxu0 %v995_v63  ;;  %411 = vmatprep.mubr.f32.mxu0 %v197_v10  ;;  %v151_v50 = vld [vmem:[%s1747_s1 + $0x3d8] sm:$0xff]  ;;  %v1043_v52 = vpack.c.bf16 %v133_v45, %v132_v43  ;;  %v1013_v53 = vpack.c.bf16 %v119_v47, %v118_v46  ;;  %v102_v54 = vld [vmem:[%s1747_s1 + $0x250] sm:$0xff]  ;;  %v120_v60 = vld [vmem:[%s1747_s1 + $0x2e0] sm:$0xff] }
  0x26   :  { %342 = vmatmul.mubr.f32.vlgmr.msra.gmra.mrb[0].mxu1 %v179_v34  ;;  %998 = vmatprep.subr.bf16.mxu0 %v997_v2  ;;  %v116_v34 = vld [vmem:[%s1747_s1 + $0x2c0] sm:$0xff]  ;;  %v103_v55 = vld [vmem:[%s1747_s1 + $0x258] sm:$0xff]  ;;  %v134_v56 = vld [vmem:[%s1747_s1 + $0x350] sm:$0xff]  ;;  %v1045_v57 = vpack.c.bf16 %v151_v50, %v150_v48 }
  0x27   :  { %1028 = vmatpush3.bf16.msra.mxu1 %v1027_v1  ;;  %481 = vmatprep.mubr.f32.mxu1 %v198_v13  ;;  %v1009_v40 = vpack.c.bf16 %v117_v35, %v116_v34  ;;  %v135_v58 = vld [vmem:[%s1747_s1 + $0x358] sm:$0xff]  ;;  %v121_v61 = vld [vmem:[%s1747_s1 + $0x2e8] sm:$0xff]  ;;  %v152_v63 = vld [vmem:[%s1747_s1 + $0x3e0] sm:$0xff]  ;;  %v1015_v2 = vpack.c.bf16 %v103_v55, %v102_v54 }
  0x28   :  { %1030 = vmatprep.subr.bf16.mxu1 %v1029_v6  ;;  %v153_v1 = vld [vmem:[%s1747_s1 + $0x3e8] sm:$0xff]  ;;  %v1047_v3 = vpack.c.bf16 %v135_v58, %v134_v56  ;;  %v1017_v4 = vpack.c.bf16 %v121_v61, %v120_v60  ;;  %v104_v5 = vld [vmem:[%s1747_s1 + $0x260] sm:$0xff]  ;;  %v122_v10 = vld [vmem:[%s1747_s1 + $0x2f0] sm:$0xff] }
  0x29   :  { %1000 = vmatpush3.bf16.msra.mxu0 %v999_v14  ;;  %v105_v6 = vld [vmem:[%s1747_s1 + $0x268] sm:$0xff]  ;;  %v136_v7 = vld [vmem:[%s1747_s1 + $0x360] sm:$0xff]  ;;  %v1049_v8 = vpack.c.bf16 %v153_v1, %v152_v63  ;;  %v123_v11 = vld [vmem:[%s1747_s1 + $0x2f8] sm:$0xff] }
  0x2a   :  { %1002 = vmatprep.subr.bf16.mxu0 %v1001_v16  ;;  %v137_v9 = vld [vmem:[%s1747_s1 + $0x368] sm:$0xff]  ;;  %v154_v12 = vld [vmem:[%s1747_s1 + $0x3f0] sm:$0xff]  ;;  %v155_v13 = vld [vmem:[%s1747_s1 + $0x3f8] sm:$0xff]  ;;  %v1019_v14 = vpack.c.bf16 %v105_v6, %v104_v5  ;;  %v1021_v16 = vpack.c.bf16 %v123_v11, %v122_v10  ;;  %v1126_v10 = vmov 0.0   ;;  %v1127_v11 = vmov 0.0|0.0  }
  0x2b   :  { %1032 = vmatpush3.bf16.msra.mxu1 %v1031_v15  ;;  %v1051_v15 = vpack.c.bf16 %v137_v9, %v136_v7  ;;  %v106_v17 = vld [vmem:[%s1747_s1 + $0x270] sm:$0xff]  ;;  %v107_v18 = vld [vmem:[%s1747_s1 + $0x278] sm:$0xff]  ;;  %v1053_v19 = vpack.c.bf16 %v155_v13, %v154_v12  ;;  %v489_v24 = vld [vmem:[%s1749_s3 + $0x8] sm:$0xff] }
  0x2c   :  { %1034 = vmatprep.subr.bf16.mxu1 %v1033_v20  ;;  %v138_v20 = vld [vmem:[%s1747_s1 + $0x370] sm:$0xff]  ;;  %v139_v21 = vld [vmem:[%s1747_s1 + $0x378] sm:$0xff]  ;;  %v1023_v22 = vpack.c.bf16 %v107_v18, %v106_v17  ;;  %v492_v31 = vld [vmem:[%s1749_s3 + $0x20] sm:$0xff] }
  0x2d   :  { %1004 = vmatpush3.bf16.msra.mxu0 %v1003_v26  ;;  %v1055_v23 = vpack.c.bf16 %v139_v21, %v138_v20  ;;  %v491_v25 = vld [vmem:[%s1749_s3 + $0x18] sm:$0xff]  ;;  %v488_v26 = vld [vmem:[%s1749_s3] sm:$0xff]  ;;  %v497_v33 = vld [vmem:[%s1749_s3 + $0x48] sm:$0xff] }
  0x2e   :  { %1006 = vmatprep.subr.bf16.mxu0 %v1005_v28  ;;  %v490_v28 = vld [vmem:[%s1749_s3 + $0x10] sm:$0xff]  ;;  %v499_v34 = vld [vmem:[%s1749_s3 + $0x58] sm:$0xff]  ;;  %v496_v37 = vld [vmem:[%s1749_s3 + $0x40] sm:$0xff] }
  0x2f   :  { %1036 = vmatpush3.bf16.msra.mxu1 %v1035_v27  ;;  %v1057_v27 = vpack.c.bf16 %v491_v25, %v489_v24  ;;  %v1059_v29 = vpack.c.bf16 %v490_v28, %v488_v26  ;;  %v1065_v36 = vpack.c.bf16 %v499_v34, %v497_v33  ;;  %v500_v43 = vld [vmem:[%s1749_s3 + $0x60] sm:$0xff]  ;;  %v505_v45 = vld [vmem:[%s1749_s3 + $0x88] sm:$0xff]  ;;  %v507_v46 = vld [vmem:[%s1749_s3 + $0x98] sm:$0xff] }
  0x30   :  { %1038 = vmatprep.subr.bf16.mxu1 %v1037_v32  ;;  %v494_v32 = vld [vmem:[%s1749_s3 + $0x30] sm:$0xff]  ;;  %v1073_v48 = vpack.c.bf16 %v507_v46, %v505_v45  ;;  %v504_v50 = vld [vmem:[%s1749_s3 + $0x80] sm:$0xff]  ;;  %v513_v60 = vld [vmem:[%s1749_s3 + $0xc8] sm:$0xff] }
  0x31   :  { %1008 = vmatpush3.bf16.msra.mxu0 %v1007_v38  ;;  %v1063_v35 = vpack.c.bf16 %v494_v32, %v492_v31  ;;  %v498_v38 = vld [vmem:[%s1749_s3 + $0x50] sm:$0xff]  ;;  %v508_v56 = vld [vmem:[%s1749_s3 + $0xa0] sm:$0xff]  ;;  %v515_v61 = vld [vmem:[%s1749_s3 + $0xd8] sm:$0xff] }
  0x32   :  { %1010 = vmatprep.subr.bf16.mxu0 %v1009_v40  ;;  %v503_v40 = vld [vmem:[%s1749_s3 + $0x78] sm:$0xff]  ;;  %v1067_v41 = vpack.c.bf16 %v498_v38, %v496_v37  ;;  %v1081_v63 = vpack.c.bf16 %v515_v61, %v513_v60  ;;  %v512_v1 = vld [vmem:[%s1749_s3 + $0xc0] sm:$0xff]  ;;  %v605_v13 = vld [vmem:[%s1750_s5 + $0x8] sm:$0xff] }
  0x33   :  { %1040 = vmatpush3.bf16.msra.mxu1 %v1039_v39  ;;  %v501_v39 = vld [vmem:[%s1749_s3 + $0x68] sm:$0xff]  ;;  %v519_v5 = vld [vmem:[%s1749_s3 + $0xf8] sm:$0xff]  ;;  %v516_v7 = vld [vmem:[%s1749_s3 + $0xe0] sm:$0xff] }
  0x34   :  { %1042 = vmatprep.subr.bf16.mxu1 %v1041_v44  ;;  %v1069_v42 = vpack.c.bf16 %v503_v40, %v501_v39  ;;  %v502_v44 = vld [vmem:[%s1749_s3 + $0x70] sm:$0xff]  ;;  %v604_v12 = vld [vmem:[%s1750_s5] sm:$0xff]  ;;  %v613_v25 = vld [vmem:[%s1750_s5 + $0x48] sm:$0xff] }
  0x35   :  { %1012 = vmatpush3.bf16.msra.mxu0 %v1011_v51  ;;  %v1071_v47 = vpack.c.bf16 %v502_v44, %v500_v43  ;;  %v506_v51 = vld [vmem:[%s1749_s3 + $0x90] sm:$0xff]  ;;  %v608_v18 = vld [vmem:[%s1750_s5 + $0x20] sm:$0xff]  ;;  %v615_v28 = vld [vmem:[%s1750_s5 + $0x58] sm:$0xff] }
  0x36   :  { %1014 = vmatprep.subr.bf16.mxu0 %v1013_v53  ;;  %v511_v53 = vld [vmem:[%s1749_s3 + $0xb8] sm:$0xff]  ;;  %v1075_v54 = vpack.c.bf16 %v506_v51, %v504_v50  ;;  %v610_v21 = vld [vmem:[%s1750_s5 + $0x30] sm:$0xff]  ;;  %v612_v24 = vld [vmem:[%s1750_s5 + $0x40] sm:$0xff] }
  0x37   :  { %1044 = vmatpush3.bf16.msra.mxu1 %v1043_v52  ;;  %v509_v52 = vld [vmem:[%s1749_s3 + $0xa8] sm:$0xff]  ;;  %v1102_v26 = vpack.c.bf16 %v613_v25, %v612_v24  ;;  %v735_v32 = vld [vmem:[%s1751_s2] ss:$0 sm:$0xff]  ;;  %v618_v50 = vld [vmem:[%s1750_s5 + $0x70] sm:$0xff] }
  0x38   :  { %1046 = vmatprep.subr.bf16.mxu1 %v1045_v57  ;;  %v1077_v55 = vpack.c.bf16 %v511_v53, %v509_v52  ;;  %v510_v57 = vld [vmem:[%s1749_s3 + $0xb0] sm:$0xff]  ;;  %v619_v51 = vld [vmem:[%s1750_s5 + $0x78] sm:$0xff]  ;;  %v524_v53 = vsub.s32 0, %v1296_v0 }
  0x39   :  { %1016 = vmatpush3.bf16.msra.mxu0 %v1015_v2  ;;  %v1079_v58 = vpack.c.bf16 %v510_v57, %v508_v56  ;;  %v514_v2 = vld [vmem:[%s1749_s3 + $0xd0] sm:$0xff]  ;;  %v1111_v52 = vpack.c.bf16 %v619_v51, %v618_v50 }
  0x3a   :  { %1018 = vmatprep.subr.bf16.mxu0 %v1017_v4  ;;  %v517_v4 = vld [vmem:[%s1749_s3 + $0xe8] sm:$0xff] }
  0x3b   :  { %1048 = vmatpush3.bf16.msra.mxu1 %v1047_v3  ;;  %v1083_v3 = vpack.c.bf16 %v514_v2, %v512_v1  ;;  %v1085_v6 = vpack.c.bf16 %v519_v5, %v517_v4 }
  0x3c   :  { %1050 = vmatprep.subr.bf16.mxu1 %v1049_v8  ;;  %v518_v8 = vld [vmem:[%s1749_s3 + $0xf0] sm:$0xff] }
  0x3d   :  { %1020 = vmatpush3.bf16.msra.mxu0 %v1019_v14  ;;  %v1087_v9 = vpack.c.bf16 %v518_v8, %v516_v7  ;;  %v606_v14 = vld [vmem:[%s1750_s5 + $0x10] sm:$0xff] }
  0x3e   :  { %1022 = vmatprep.subr.bf16.mxu0 %v1021_v16  ;;  %v607_v16 = vld [vmem:[%s1750_s5 + $0x18] sm:$0xff] }
  0x3f   :  { %1052 = vmatpush3.bf16.msra.mxu1 %v1051_v15  ;;  %v1090_v15 = vpack.c.bf16 %v605_v13, %v604_v12  ;;  %v1093_v17 = vpack.c.bf16 %v607_v16, %v606_v14 }
  0x40   :  { %1054 = vmatprep.subr.bf16.mxu1 %v1053_v19  ;;  %v609_v19 = vld [vmem:[%s1750_s5 + $0x28] sm:$0xff] }
  0x41   :  { %1024 = vmatpush3.bf16.msra.mxu0 %v1023_v22  ;;  %v1096_v20 = vpack.c.bf16 %v609_v19, %v608_v18  ;;  %v611_v22 = vld [vmem:[%s1750_s5 + $0x38] sm:$0xff] }
  0x42   :  { %1058 = vmatprep.subr.bf16.mxu0 %v1057_v27  ;;  %v614_v27 = vld [vmem:[%s1750_s5 + $0x50] sm:$0xff] }
  0x43   :  { %1056 = vmatpush3.bf16.msra.mxu1 %v1055_v23  ;;  %v1099_v23 = vpack.c.bf16 %v611_v22, %v610_v21 }
  0x44   :  { %412 = vmatmul.mubr.f32.vlgmr.msra.gmra.mrb[2].mxu0 %v1401_v59  ;;  %v493_v59 = vld [vmem:[%s1749_s3 + $0x28] sm:$0xff]  ;;  %1089 = vmatprep.subr.bf16.mxu1 %v1127_v11 }
  0x45   :  { %1060 = vmatpush1.bf16.msra.mxu0 %v1059_v29  ;;  %596 = vmatprep.mubr.f32.mxu0 %v1126_v10  ;;  %v617_v29 = vld [vmem:[%s1750_s5 + $0x68] sm:$0xff] }
  0x46   :  { %482 = vmatmul.mubr.f32.vlgmr.msra.gmra.mrb[2].mxu1 %v1409_v62  ;;  %v495_v62 = vld [vmem:[%s1749_s3 + $0x38] sm:$0xff] }
  0x47   :  { %v1061_v30 = vpack.c.bf16 %v495_v62, %v493_v59  ;;  %1091 = vmatpush3.bf16.msra.mxu1 %v1090_v15  ;;  %v1105_v59 = vpack.c.bf16 %v615_v28, %v614_v27  ;;  %v616_v62 = vld [vmem:[%s1750_s5 + $0x60] sm:$0xff]  ;;  %926 = vmatprep.mubr.msk.f32.mxu1 %vm1128_vm0, %v1126_v10 }
  0x48   :  { %1092 = vmatprep.subr.bf16.mxu1 %v1127_v11 }
  0x49   :  { %1062 = vmatprep.subr.bf16.mxu0 %v1061_v30  ;;  %v1108_v30 = vpack.c.bf16 %v617_v29, %v616_v62 }
  0x4a   :  { %1064 = vmatpush1.bf16.msra.mxu0 %v1063_v35 }
  0x4b   :  { %1066 = vmatprep.subr.bf16.mxu0 %v1065_v36  ;;  %1094 = vmatpush3.bf16.msra.mxu1 %v1093_v17 }
  0x4c   :  { %1095 = vmatprep.subr.bf16.mxu1 %v1127_v11 }
  0x4e   :  { %1068 = vmatpush1.bf16.msra.mxu0 %v1067_v41 }
  0x4f   :  { %1070 = vmatprep.subr.bf16.mxu0 %v1069_v42  ;;  %1097 = vmatpush3.bf16.msra.mxu1 %v1096_v20 }
  0x50   :  { %1098 = vmatprep.subr.bf16.mxu1 %v1127_v11 }
  0x52   :  { %1072 = vmatpush1.bf16.msra.mxu0 %v1071_v47 }
  0x53   :  { %1074 = vmatprep.subr.bf16.mxu0 %v1073_v48  ;;  %1100 = vmatpush3.bf16.msra.mxu1 %v1099_v23 }
  0x54   :  { %1101 = vmatprep.subr.bf16.mxu1 %v1127_v11 }
  0x56   :  { %1076 = vmatpush1.bf16.msra.mxu0 %v1075_v54  ;;  %v520_v54 = vld [vmem:[%s1753_s4] sm:$0x3] }
  0x57   :  { %1078 = vmatprep.subr.bf16.mxu0 %v1077_v55  ;;  %1103 = vmatpush3.bf16.msra.mxu1 %v1102_v26  ;;  %v528_v55 = vsub.s32 1, %v1296_v0  ;;  %v525_v56 = vrot.slane %v520_v54, %v524_v53  ;;  %v716_v0 = vand.u32 127, %v169_v49 }
  0x58   :  { %1104 = vmatprep.subr.bf16.mxu1 %v1127_v11 }
  0x59   :  { %v529_v57 = vrot.slane %v520_v54, %v528_v55  ;;  %vm724_vm3 = vcmp.eq.s32.totalorder %v716_v0, 1  ;;  %vm723_vm4 = vcmp.eq.s32.totalorder %v716_v0, 0 }
  0x5a   :  { %1080 = vmatpush1.bf16.msra.mxu0 %v1079_v58 }
  0x5b   :  { %1082 = vmatprep.subr.bf16.mxu0 %v1081_v63  ;;  %1106 = vmatpush3.bf16.msra.mxu1 %v1105_v59 }
  0x5c   :  { %1107 = vmatprep.subr.bf16.mxu1 %v1127_v11 }
  0x5e   :  { %1084 = vmatpush1.bf16.msra.mxu0 %v1083_v3 }
  0x5f   :  { %1086 = vmatprep.subr.bf16.mxu0 %v1085_v6  ;;  %1109 = vmatpush3.bf16.msra.mxu1 %v1108_v30  ;;  %v717_v6 = vcvt.s32.f32 %v716_v0 }
  0x60   :  { %1110 = vmatprep.subr.bf16.mxu1 %v1127_v11  ;;  %v736_v11 = vld [vmem:[%s1754_s6] ss:$0 sm:$0xff] }
  0x62   :  { %1088 = vmatpush1.bf16.msra.mxu0 %v1087_v9 }
  0x63   :  { %1112 = vmatpush3.bf16.msra.mxu1 %v1111_v52 }
  0xf7   :  { %v769_v31 = vpop.f32.mrb[0].mxu0 }
  0xf8   :  { %v770_v33 = vpop.f32.mrb[1].mxu0 }
  0xf9   :  { %v804_v34 = vpop.f32.mrb[0].mxu1  ;;  %v771_v35 = vadd.f32 %v770_v33, %v769_v31 }
  0xfa   :  { %v805_v36 = vpop.f32.mrb[1].mxu1 }
  0xfb   :  { %v806_v37 = vadd.f32 %v805_v36, %v804_v34  ;;  %v274_v38 = vadd.f32 %v771_v35, %v735_v32 }
  0xfd   :  { %v344_v39 = vadd.f32 %v806_v37, %v274_v38 }
 0x117   :  { %v839_v40 = vpop.f32.mrb[2].mxu0 }
 0x118   :  { %v840_v41 = vpop.f32.mrb[3].mxu0 }
 0x119   :  { %v874_v42 = vpop.f32.mrb[2].mxu1  ;;  %v841_v43 = vadd.f32 %v840_v41, %v839_v40 }
 0x11a   :  { %v875_v44 = vpop.f32.mrb[3].mxu1 }
 0x11b   :  { %v876_v45 = vadd.f32 %v875_v44, %v874_v42  ;;  %v414_v46 = vadd.f32 %v841_v43, %v344_v39 }
 0x11d   :  { %v484_v47 = vadd.f32 %v876_v45, %v414_v46 }
 0x11f   :  { %v487_v48 = vmax.f32 %v484_v47, 0.0 }
 0x121   :  { %727 = vst [vmem:[%s1752_s7] sm:$0x3] %v487_v48  ;;  %597 = vmatmul.mubr.f32.vlgmr.msra.gmra.mrb[4].mxu0 %v487_v48 }
 0x1f4   :  { %v598_v58 = vpop.f32.mrb[4].mxu0 }
 0x1f5   :  { %v599_v60 = vadd.f32 %v598_v58, %v525_v56  ;;  %v600_v61 = vpop.f32.mrb[5].mxu0 }
 0x1f6   :  { %v601_v63 = vadd.f32 %v600_v61, %v529_v57 }
 0x1f7   :  { %v603_v1 = vmax.f32 %v599_v60, 0.0 }
 0x1f8   :  { %729 = vst [vmem:[%s1752_s7 + $0x4] sm:$0x3] %v601_v63  ;;  %v705_v2 = vsel %vm698_vm1, %v601_v63, -inf }
 0x1f9   :  { %706 = vmax.xlane.f32.xlu0 %v705_v2  ;;  %927 = vmatmul.mubr.f32.vlgmr.msra.gmra.mrb[4].mxu1 %v603_v1 }
 0x286   :  { %v707_v3 = vpop.xlane.xlu0 %706 }
 0x287   :  { %v708_v4 = vsub.f32 %v601_v63, %v707_v3  ;;  %vm718_vm2 = vcmp.ge.f32.partialorder %v601_v63, %v707_v3 }
 0x288   :  { %v719_v9 = vsel %vm718_vm2, %v717_v6, 128.0 }
 0x289   :  { %v709_v5 = vmul.f32 1.442695, %v708_v4  ;;  %v720_v10 = vsel %vm698_vm1, %v719_v9, inf }
 0x28b   :  { %1119 = vpow2.f32 %v709_v5 }
 0x295   :  { %v1120_v7 = vpop.eup %1119 }
 0x296   :  { %v711_v8 = vsel %vm698_vm1, %v1120_v7, 0.0 }
 0x297   :  { %712 = vadd.xlane.f32.xlu1 %v711_v8 }
 0x29b   :  { %721 = vmin.xlane.f32.xlu1 %v720_v10 }
 0x2cc   :  { %v693_v12 = vpop.f32.mrb[4].mxu1 }
 0x2cd   :  { %v694_v13 = vadd.f32 %v736_v11, %v693_v12  ;;  %v928_v14 = vpop.f32.mrb[5].mxu1 }
 0x2cf   :  { %v697_v15 = vmul.f32 %v694_v13, %v694_v13 }
 0x2d1   :  { %v699_v49 = vsel %vm698_vm1, %v697_v15, 0.0 }
 0x2d2   :  { %700 = vadd.xlane.f32.xlu0 %v699_v49 }
 0x324   :  { %v713_v16 = vpop.xlane.xlu1 %712 }
 0x325   :  { %1121 = vrcp.f32 %v713_v16 }
 0x328   :  { %v722_v17 = vpop.xlane.xlu1 %721 }
 0x329   :  { %v725_v19 = vsel %vm724_vm3, %v722_v17, 0.0 }
 0x32f   :  { %v1122_v18 = vpop.eup %1121 }
 0x330   :  { %v726_v20 = vsel %vm723_vm4, %v1122_v18, %v725_v19 }
 0x331   :  { %730 = vst [vmem:[%s1752_s7 + $0x6] sm:$0x3] %v726_v20 }
 0x35f   :  { %v701_v21 = vpop.xlane.xlu0 %700 }
 0x360   :  { %v702_v22 = vmax.f32 %v701_v21, 1e-24 }
 0x362   :  { %1123 = vrsqrt.f32 %v702_v22 }
 0x36c   :  { %v1124_v23 = vpop.eup %1123 }
 0x36d   :  { %v704_v24 = vmul.f32 %v1124_v23, %v694_v13 }
 0x36f   :  { %728 = vst [vmem:[%s1752_s7 + $0x2] sm:$0x3] %v704_v24 }

</bundles_post_ra>
